<compile_context>
chip_gen: v5e
topology: v5e:2x2
jax: 0.10.0
libtpu: 0.0.40
codegen_flags: <defaults>
</compile_context>

<pallas_src>
import functools
import math

import jax
import jax.numpy as jnp
from jax.experimental import pallas as pl
from jax.experimental.pallas import tpu as pltpu


# ----------------------------------------------------------------------------
# Fused BertLayer kernel (one grid step == one batch element)
# ----------------------------------------------------------------------------

def _layernorm(x, gamma, beta, eps=1e-12):
    mu = jnp.mean(x, axis=-1, keepdims=True)
    var = jnp.mean(jnp.square(x - mu), axis=-1, keepdims=True)
    return (x - mu) * jax.lax.rsqrt(var + eps) * gamma + beta


def _bert_layer_kernel(x_ref, mask_ref,
                       wqkv_ref, bqkv_ref,
                       wao_ref, bao_ref, gao_ref, beao_ref,
                       wi_ref, bi_ref, wo_ref, bo_ref, go_ref, beo_ref,
                       o_ref, ctx_ref, *, n_heads):
    x = x_ref[0].astype(jnp.float32)          # (S, H)  residual path in f32
    mask = mask_ref[0].astype(jnp.float32)    # (1, S)  additive attention mask
    S, H = x.shape
    dh = H // n_heads
    scale = 1.0 / math.sqrt(dh)

    x_bf = x.astype(jnp.bfloat16)

    # ---- fused Q/K/V projection: one bf16 MXU matmul against the packed
    # (H, 3H) weight, f32 accumulation.
    qkv = jnp.dot(x_bf, wqkv_ref[...], preferred_element_type=jnp.float32)
    qkv = qkv + bqkv_ref[...]                 # (S, 3H) f32
    # Fold 1/sqrt(dh) into q before the QK^T matmul (S*dh mults, not S*S).
    q = (qkv[:, :H] * scale).astype(jnp.bfloat16)
    k = qkv[:, H:2 * H].astype(jnp.bfloat16)
    v = qkv[:, 2 * H:].astype(jnp.bfloat16)

    # Hoist the mask broadcast out of the unrolled head loop (no CSE of
    # broadcast_in_dim inside the loop).
    mask_b = jnp.broadcast_to(mask, (S, S))

    # ---- multi-head attention; heads are static lane slices.  Each head's
    # context is written into the (S, H) f32 VMEM scratch at lane offset
    # h*dh, so the attention-output projection is ONE full-depth matmul.
    for h in range(n_heads):
        sl = slice(h * dh, (h + 1) * dh)
        qh = q[:, sl]                         # (S, dh) bf16
        kh = k[:, sl]                         # (S, dh) bf16
        vh = v[:, sl]                         # (S, dh) bf16
        # q · k^T via dot_general contracting the last dims (no K transpose).
        scores = jax.lax.dot_general(
            qh, kh, (((1,), (1,)), ((), ())),
            preferred_element_type=jnp.float32)                   # (S, S) f32
        scores = scores + mask_b
        # Softmax in f32; divide via approx reciprocal on the EUP.
        m = jnp.max(scores, axis=-1, keepdims=True)
        p = jnp.exp(scores - m)
        denom = jnp.sum(p, axis=-1, keepdims=True)
        probs = p * pl.reciprocal(denom, approx=True)
        ctx_h = jnp.dot(probs.astype(jnp.bfloat16), vh,
                        preferred_element_type=jnp.float32)       # (S, dh) f32
        ctx_ref[:, sl] = ctx_h

    # ---- single attention-output projection (K = H, full MXU depth)
    att = jnp.dot(ctx_ref[...].astype(jnp.bfloat16), wao_ref[...],
                  preferred_element_type=jnp.float32)
    att = att + bao_ref[...]

    # ---- BertSelfOutput: dropout(identity) + add & LayerNorm (f32)
    h1 = _layernorm(att + x, gao_ref[...], beao_ref[...])

    # ---- BertIntermediate: dense (bf16 MXU) + gelu (tanh approx, EUP)
    inter = jnp.dot(h1.astype(jnp.bfloat16), wi_ref[...],
                    preferred_element_type=jnp.float32)
    inter = jax.nn.gelu(inter + bi_ref[...], approximate=True)

    # ---- BertOutput: dense (bf16 MXU) + dropout(identity) + add & LayerNorm
    out = jnp.dot(inter.astype(jnp.bfloat16), wo_ref[...],
                  preferred_element_type=jnp.float32)
    out = out + bo_ref[...]
    h2 = _layernorm(out + h1, go_ref[...], beo_ref[...])

    o_ref[0] = h2.astype(o_ref.dtype)


def _const_spec(shape):
    """Grid-invariant (weight/bias/LN) spec: same block every step, single-buffered."""
    return pl.BlockSpec(shape, lambda b: (0,) * len(shape),
                        pipeline_mode=pl.Buffered(1))


def bert_layer_forward(p, hidden_states, attention_mask, n_heads):
    """One BertLayer.  hidden_states: (B, S, H); attention_mask: additive mask
    broadcastable to (B, 1, 1, S) (added to the attention scores, as in the
    PyTorch source)."""
    B, S, H = hidden_states.shape
    inter = p["w_i"].shape[1]
    mask3 = jnp.broadcast_to(
        attention_mask.reshape(B, 1, -1), (B, 1, S)).astype(jnp.float32)

    kernel = functools.partial(_bert_layer_kernel, n_heads=n_heads)

    # Advisory cost estimate for XLA scheduling of the per-layer custom calls.
    flops = 2 * B * S * (3 * H * H + 2 * S * H + H * H + 2 * H * inter)
    transcendentals = B * (n_heads * S * S + S * inter)
    bytes_accessed = (2 * (3 * H * H + H * H + 2 * H * inter)     # bf16 weights
                      + 4 * (2 * B * S * H + B * S))              # f32 acts + mask
    cost = pl.CostEstimate(flops=flops, transcendentals=transcendentals,
                           bytes_accessed=bytes_accessed)

    return pl.pallas_call(
        kernel,
        grid=(B,),
        in_specs=[
            pl.BlockSpec((1, S, H), lambda b: (b, 0, 0)),      # hidden_states
            pl.BlockSpec((1, 1, S), lambda b: (b, 0, 0)),      # attention mask
            _const_spec((H, 3 * H)),                           # fused Wqkv (bf16)
            _const_spec((1, 3 * H)),                           # fused bqkv
            _const_spec((H, H)),                               # W attn-output
            _const_spec((1, H)),                               # b attn-output
            _const_spec((1, H)),                               # LN1 gamma (f32)
            _const_spec((1, H)),                               # LN1 beta  (f32)
            _const_spec((H, inter)),                           # W intermediate
            _const_spec((1, inter)),                           # b intermediate
            _const_spec((inter, H)),                           # W output
            _const_spec((1, H)),                               # b output
            _const_spec((1, H)),                               # LN2 gamma (f32)
            _const_spec((1, H)),                               # LN2 beta  (f32)
        ],
        out_specs=pl.BlockSpec((1, S, H), lambda b: (b, 0, 0)),
        out_shape=jax.ShapeDtypeStruct((B, S, H), hidden_states.dtype),
        scratch_shapes=[pltpu.VMEM((S, H), jnp.float32)],      # per-head ctx slab
        compiler_params=pltpu.CompilerParams(
            dimension_semantics=("parallel",),
            vmem_limit_bytes=64 * 1024 * 1024),
        cost_estimate=cost,
    )(hidden_states, mask3,
      p["w_qkv"], p["b_qkv"],
      p["w_ao"], p["b_ao"], p["g_ao"], p["be_ao"],
      p["w_i"], p["b_i"], p["w_o"], p["b_o"], p["g_o"], p["be_o"])


# ----------------------------------------------------------------------------
# BertSelfEncoder.forward
# ----------------------------------------------------------------------------

def bert_self_encoder(params, hidden_states, attention_mask, n_heads,
                      output_all_encoded_layers=True):
    all_encoder_layers = []
    for layer_params in params["layers"]:
        hidden_states = bert_layer_forward(layer_params, hidden_states,
                                           attention_mask, n_heads)
        if output_all_encoded_layers:
            all_encoder_layers.append(hidden_states)
    if not output_all_encoded_layers:
        all_encoder_layers.append(hidden_states)
    return all_encoder_layers


# ----------------------------------------------------------------------------
# Parameters (deterministic, synthetic).
# Dense weights/biases pre-packed in bf16 (MXU-native); LN params stay f32.
# ----------------------------------------------------------------------------

def _init_dense(key, din, dout):
    w = jax.random.normal(key, (din, dout), jnp.float32) * 0.02
    b = jnp.zeros((1, dout), jnp.float32)
    return w, b


def _init_bert_layer(key, hidden, inter):
    ks = jax.random.split(key, 6)
    wq, bq = _init_dense(ks[0], hidden, hidden)
    wk, bk = _init_dense(ks[1], hidden, hidden)
    wv, bv = _init_dense(ks[2], hidden, hidden)
    w_ao, b_ao = _init_dense(ks[3], hidden, hidden)
    w_i, b_i = _init_dense(ks[4], hidden, inter)
    w_o, b_o = _init_dense(ks[5], inter, hidden)
    bf = jnp.bfloat16
    return {
        "w_qkv": jnp.concatenate([wq, wk, wv], axis=1).astype(bf),   # (H, 3H)
        "b_qkv": jnp.concatenate([bq, bk, bv], axis=1).astype(bf),   # (1, 3H)
        "w_ao": w_ao.astype(bf), "b_ao": b_ao.astype(bf),
        "g_ao": jnp.ones((1, hidden), jnp.float32),
        "be_ao": jnp.zeros((1, hidden), jnp.float32),
        "w_i": w_i.astype(bf), "b_i": b_i.astype(bf),
        "w_o": w_o.astype(bf), "b_o": b_o.astype(bf),
        "g_o": jnp.ones((1, hidden), jnp.float32),
        "be_o": jnp.zeros((1, hidden), jnp.float32),
    }


def init_params(key, hidden, inter, num_layers=1):
    keys = jax.random.split(key, num_layers)
    return {"layers": [_init_bert_layer(k, hidden, inter) for k in keys]}


# ----------------------------------------------------------------------------
# Pure-JAX f32 reference (same bf16-quantized weight values, f32 math)
# ----------------------------------------------------------------------------

def _ln_ref(x, g, b, eps=1e-12):
    mu = jnp.mean(x, axis=-1, keepdims=True)
    var = jnp.mean(jnp.square(x - mu), axis=-1, keepdims=True)
    return (x - mu) * jax.lax.rsqrt(var + eps) * g + b


def bert_layer_reference(p, x, mask_ext, n_heads):
    f32 = lambda a: a.astype(jnp.float32)
    B, S, H = x.shape
    dh = H // n_heads
    qkv = x @ f32(p["w_qkv"]) + f32(p["b_qkv"])[0]
    q, k, v = qkv[..., :H], qkv[..., H:2 * H], qkv[..., 2 * H:]
    split = lambda t: t.reshape(B, S, n_heads, dh).transpose(0, 2, 1, 3)
    qh, kh, vh = split(q), split(k), split(v)
    scores = jnp.einsum("bhqd,bhkd->bhqk", qh, kh) / math.sqrt(dh)
    scores = scores + mask_ext                     # (B, 1, 1, S) broadcast
    probs = jax.nn.softmax(scores, axis=-1)
    ctx = jnp.einsum("bhqk,bhkd->bhqd", probs, vh)
    ctx = ctx.transpose(0, 2, 1, 3).reshape(B, S, H)
    att = ctx @ f32(p["w_ao"]) + f32(p["b_ao"])[0]
    h1 = _ln_ref(att + x, p["g_ao"][0], p["be_ao"][0])
    inter = jax.nn.gelu(h1 @ f32(p["w_i"]) + f32(p["b_i"])[0], approximate=False)
    out = inter @ f32(p["w_o"]) + f32(p["b_o"])[0]
    return _ln_ref(out + h1, p["g_o"][0], p["be_o"][0])


# ----------------------------------------------------------------------------
# Demo
# ----------------------------------------------------------------------------

if __name__ == "__main__":
    B = 2         # batch (>= 2 so both v7x TensorCores get a parallel step)
    S = 8         # sequence length
    HIDDEN = 32   # config.hidden_size
    N_HEADS = 4   # config.num_attention_heads
    INTER = 64    # config.intermediate_size

    key = jax.random.PRNGKey(0)
    kp, kx, km = jax.random.split(key, 3)

    params = init_params(kp, HIDDEN, INTER, num_layers=1)
    hidden_states = jax.random.normal(kx, (B, S, HIDDEN), jnp.float32)
    mask01 = (jax.random.uniform(km, (B, S)) > 0.2).astype(jnp.float32)
    # Standard BERT extended additive mask (the module adds it to the scores).
    extended_mask = ((1.0 - mask01) * -10000.0)[:, None, None, :]

    layers = bert_self_encoder(params, hidden_states, extended_mask, N_HEADS,
                               output_all_encoded_layers=True)
    out = layers[-1]
    jax.block_until_ready(out)

    ref = bert_layer_reference(params["layers"][0], hidden_states,
                               extended_mask, N_HEADS)
    assert out.shape == (B, S, HIDDEN)
    assert bool(jnp.all(jnp.isfinite(out)))
    # bf16 MXU operands + tanh-gelu + approx-reciprocal softmax vs f32/erf ref.
    assert bool(jnp.allclose(out, ref, atol=3e-2, rtol=3e-2))
    print("KERNEL_OK")
</pallas_src>

<mosaic_0001>
module attributes {stable_mosaic.version = 11 : i64} {
  func.func @_bert_layer_kernel(%arg0: i32, %arg1: memref<1x8x32xf32, #tpu.memory_space<vmem>>, %arg2: memref<1x1x8xf32, #tpu.memory_space<vmem>>, %arg3: memref<32x96xbf16, #tpu.memory_space<vmem>>, %arg4: memref<1x96xbf16, #tpu.memory_space<vmem>>, %arg5: memref<32x32xbf16, #tpu.memory_space<vmem>>, %arg6: memref<1x32xbf16, #tpu.memory_space<vmem>>, %arg7: memref<1x32xf32, #tpu.memory_space<vmem>>, %arg8: memref<1x32xf32, #tpu.memory_space<vmem>>, %arg9: memref<32x64xbf16, #tpu.memory_space<vmem>>, %arg10: memref<1x64xbf16, #tpu.memory_space<vmem>>, %arg11: memref<64x32xbf16, #tpu.memory_space<vmem>>, %arg12: memref<1x32xbf16, #tpu.memory_space<vmem>>, %arg13: memref<1x32xf32, #tpu.memory_space<vmem>>, %arg14: memref<1x32xf32, #tpu.memory_space<vmem>>, %arg15: memref<1x8x32xf32, #tpu.memory_space<vmem>>, %arg16: memref<8x32xf32, #tpu.memory_space<vmem>>) attributes {dimension_semantics = [#tpu.dimension_semantics<parallel>], iteration_bounds = array<i64: 2>, scalar_prefetch = 0 : i64, scratch_operands = 1 : i64, tpu.core_type = #tpu.core_type<tc>, window_params = [{transform_indices = @transform_0, window_bounds = array<i64: 1, 8, 32>}, {transform_indices = @transform_1, window_bounds = array<i64: 1, 1, 8>}, {pipeline_mode = #tpu.pipeline_mode<synchronous>, transform_indices = @transform_2, window_bounds = array<i64: 32, 96>}, {pipeline_mode = #tpu.pipeline_mode<synchronous>, transform_indices = @transform_3, window_bounds = array<i64: 1, 96>}, {pipeline_mode = #tpu.pipeline_mode<synchronous>, transform_indices = @transform_4, window_bounds = array<i64: 32, 32>}, {pipeline_mode = #tpu.pipeline_mode<synchronous>, transform_indices = @transform_5, window_bounds = array<i64: 1, 32>}, {pipeline_mode = #tpu.pipeline_mode<synchronous>, transform_indices = @transform_6, window_bounds = array<i64: 1, 32>}, {pipeline_mode = #tpu.pipeline_mode<synchronous>, transform_indices = @transform_7, window_bounds = array<i64: 1, 32>}, {pipeline_mode = #tpu.pipeline_mode<synchronous>, transform_indices = @transform_8, window_bounds = array<i64: 32, 64>}, {pipeline_mode = #tpu.pipeline_mode<synchronous>, transform_indices = @transform_9, window_bounds = array<i64: 1, 64>}, {pipeline_mode = #tpu.pipeline_mode<synchronous>, transform_indices = @transform_10, window_bounds = array<i64: 64, 32>}, {pipeline_mode = #tpu.pipeline_mode<synchronous>, transform_indices = @transform_11, window_bounds = array<i64: 1, 32>}, {pipeline_mode = #tpu.pipeline_mode<synchronous>, transform_indices = @transform_12, window_bounds = array<i64: 1, 32>}, {pipeline_mode = #tpu.pipeline_mode<synchronous>, transform_indices = @transform_13, window_bounds = array<i64: 1, 32>}, {transform_indices = @transform_14, window_bounds = array<i64: 1, 8, 32>}]} {
    %c0 = arith.constant 0 : index
    %c0_0 = arith.constant 0 : index
    %c0_1 = arith.constant 0 : index
    %0 = vector.load %arg1[%c0, %c0_0, %c0_1] : memref<1x8x32xf32, #tpu.memory_space<vmem>>, vector<1x8x32xf32>
    %1 = vector.shape_cast %0 : vector<1x8x32xf32> to vector<8x32xf32>
    %c0_2 = arith.constant 0 : index
    %c0_3 = arith.constant 0 : index
    %c0_4 = arith.constant 0 : index
    %2 = vector.load %arg2[%c0_2, %c0_3, %c0_4] : memref<1x1x8xf32, #tpu.memory_space<vmem>>, vector<1x1x8xf32>
    %3 = vector.shape_cast %2 : vector<1x1x8xf32> to vector<1x8xf32>
    %4 = arith.truncf %1 : vector<8x32xf32> to vector<8x32xbf16>
    %c0_5 = arith.constant 0 : index
    %c0_6 = arith.constant 0 : index
    %5 = vector.load %arg3[%c0_5, %c0_6] : memref<32x96xbf16, #tpu.memory_space<vmem>>, vector<32x96xbf16>
    %cst = arith.constant dense<0.000000e+00> : vector<8x96xf32>
    %6 = tpu.matmul %4, %5, %cst {dimension_numbers = #tpu.dot_dimension_numbers<[1], [0], [0], [1], [0, 0, 1, 1], [], []>} : vector<8x32xbf16>, vector<32x96xbf16>, vector<8x96xf32> -> vector<8x96xf32>
    %c0_7 = arith.constant 0 : index
    %c0_8 = arith.constant 0 : index
    %7 = vector.load %arg4[%c0_7, %c0_8] : memref<1x96xbf16, #tpu.memory_space<vmem>>, vector<1x96xbf16>
    %8 = arith.extf %7 : vector<1x96xbf16> to vector<1x96xf32>
    %9 = vector.broadcast %8 : vector<1x96xf32> to vector<8x96xf32>
    %10 = arith.addf %6, %9 : vector<8x96xf32>
    %11 = vector.extract_strided_slice %10 {offsets = [0, 0], sizes = [8, 32], strides = [1, 1]} : vector<8x96xf32> to vector<8x32xf32>
    %cst_9 = arith.constant 0.353553385 : f32
    %12 = vector.broadcast %cst_9 : f32 to vector<8x32xf32>
    %13 = arith.mulf %11, %12 : vector<8x32xf32>
    %14 = arith.truncf %13 : vector<8x32xf32> to vector<8x32xbf16>
    %15 = vector.extract_strided_slice %10 {offsets = [0, 32], sizes = [8, 32], strides = [1, 1]} : vector<8x96xf32> to vector<8x32xf32>
    %16 = arith.truncf %15 : vector<8x32xf32> to vector<8x32xbf16>
    %17 = vector.extract_strided_slice %10 {offsets = [0, 64], sizes = [8, 32], strides = [1, 1]} : vector<8x96xf32> to vector<8x32xf32>
    %18 = arith.truncf %17 : vector<8x32xf32> to vector<8x32xbf16>
    %19 = vector.shape_cast %3 : vector<1x8xf32> to vector<1x8xf32>
    %20 = vector.broadcast %19 : vector<1x8xf32> to vector<8x8xf32>
    %21 = vector.extract_strided_slice %14 {offsets = [0, 0], sizes = [8, 8], strides = [1, 1]} : vector<8x32xbf16> to vector<8x8xbf16>
    %22 = vector.extract_strided_slice %16 {offsets = [0, 0], sizes = [8, 8], strides = [1, 1]} : vector<8x32xbf16> to vector<8x8xbf16>
    %23 = vector.extract_strided_slice %18 {offsets = [0, 0], sizes = [8, 8], strides = [1, 1]} : vector<8x32xbf16> to vector<8x8xbf16>
    %cst_10 = arith.constant dense<0.000000e+00> : vector<8x8xf32>
    %24 = tpu.matmul %21, %22, %cst_10 {dimension_numbers = #tpu.dot_dimension_numbers<[1], [1], [0], [0], [0, 0, 1, 0], [], []>} : vector<8x8xbf16>, vector<8x8xbf16>, vector<8x8xf32> -> vector<8x8xf32>
    %25 = arith.addf %24, %20 : vector<8x8xf32>
    %cst_11 = arith.constant dense<0xFF800000> : vector<8xf32>
    %26 = vector.multi_reduction <maximumf>, %25, %cst_11 [1] : vector<8x8xf32> to vector<8xf32>
    %27 = vector.shape_cast %26 : vector<8xf32> to vector<8x1xf32>
    %28 = vector.broadcast %27 : vector<8x1xf32> to vector<8x8xf32>
    %29 = arith.subf %25, %28 : vector<8x8xf32>
    %30 = math.exp %29 : vector<8x8xf32>
    %cst_12 = arith.constant dense<0.000000e+00> : vector<8xf32>
    %31 = vector.multi_reduction <add>, %30, %cst_12 [1] : vector<8x8xf32> to vector<8xf32>
    %32 = vector.shape_cast %31 : vector<8xf32> to vector<8x1xf32>
    %33 = tpu.reciprocal %32 {approx = true} : vector<8x1xf32> -> vector<8x1xf32>
    %34 = vector.broadcast %33 : vector<8x1xf32> to vector<8x8xf32>
    %35 = arith.mulf %30, %34 : vector<8x8xf32>
    %36 = arith.truncf %35 : vector<8x8xf32> to vector<8x8xbf16>
    %cst_13 = arith.constant dense<0.000000e+00> : vector<8x8xf32>
    %37 = tpu.matmul %36, %23, %cst_13 {dimension_numbers = #tpu.dot_dimension_numbers<[1], [0], [0], [1], [0, 0, 1, 1], [], []>} : vector<8x8xbf16>, vector<8x8xbf16>, vector<8x8xf32> -> vector<8x8xf32>
    %c0_14 = arith.constant 0 : index
    %c0_15 = arith.constant 0 : index
    %38 = vector.load %arg16[%c0_14, %c0_15] : memref<8x32xf32, #tpu.memory_space<vmem>>, vector<8x8xf32>
    tpu.vector_store %arg16[%c0_14, %c0_15], %37 {strides = array<i32>} : memref<8x32xf32, #tpu.memory_space<vmem>>, vector<8x8xf32>,
    %39 = vector.extract_strided_slice %14 {offsets = [0, 8], sizes = [8, 8], strides = [1, 1]} : vector<8x32xbf16> to vector<8x8xbf16>
    %40 = vector.extract_strided_slice %16 {offsets = [0, 8], sizes = [8, 8], strides = [1, 1]} : vector<8x32xbf16> to vector<8x8xbf16>
    %41 = vector.extract_strided_slice %18 {offsets = [0, 8], sizes = [8, 8], strides = [1, 1]} : vector<8x32xbf16> to vector<8x8xbf16>
    %cst_16 = arith.constant dense<0.000000e+00> : vector<8x8xf32>
    %42 = tpu.matmul %39, %40, %cst_16 {dimension_numbers = #tpu.dot_dimension_numbers<[1], [1], [0], [0], [0, 0, 1, 0], [], []>} : vector<8x8xbf16>, vector<8x8xbf16>, vector<8x8xf32> -> vector<8x8xf32>
    %43 = arith.addf %42, %20 : vector<8x8xf32>
    %cst_17 = arith.constant dense<0xFF800000> : vector<8xf32>
    %44 = vector.multi_reduction <maximumf>, %43, %cst_17 [1] : vector<8x8xf32> to vector<8xf32>
    %45 = vector.shape_cast %44 : vector<8xf32> to vector<8x1xf32>
    %46 = vector.broadcast %45 : vector<8x1xf32> to vector<8x8xf32>
    %47 = arith.subf %43, %46 : vector<8x8xf32>
    %48 = math.exp %47 : vector<8x8xf32>
    %cst_18 = arith.constant dense<0.000000e+00> : vector<8xf32>
    %49 = vector.multi_reduction <add>, %48, %cst_18 [1] : vector<8x8xf32> to vector<8xf32>
    %50 = vector.shape_cast %49 : vector<8xf32> to vector<8x1xf32>
    %51 = tpu.reciprocal %50 {approx = true} : vector<8x1xf32> -> vector<8x1xf32>
    %52 = vector.broadcast %51 : vector<8x1xf32> to vector<8x8xf32>
    %53 = arith.mulf %48, %52 : vector<8x8xf32>
    %54 = arith.truncf %53 : vector<8x8xf32> to vector<8x8xbf16>
    %cst_19 = arith.constant dense<0.000000e+00> : vector<8x8xf32>
    %55 = tpu.matmul %54, %41, %cst_19 {dimension_numbers = #tpu.dot_dimension_numbers<[1], [0], [0], [1], [0, 0, 1, 1], [], []>} : vector<8x8xbf16>, vector<8x8xbf16>, vector<8x8xf32> -> vector<8x8xf32>
    %c0_20 = arith.constant 0 : index
    %c8 = arith.constant 8 : index
    %56 = vector.load %arg16[%c0_20, %c8] : memref<8x32xf32, #tpu.memory_space<vmem>>, vector<8x8xf32>
    tpu.vector_store %arg16[%c0_20, %c8], %55 {strides = array<i32>} : memref<8x32xf32, #tpu.memory_space<vmem>>, vector<8x8xf32>,
    %57 = vector.extract_strided_slice %14 {offsets = [0, 16], sizes = [8, 8], strides = [1, 1]} : vector<8x32xbf16> to vector<8x8xbf16>
    %58 = vector.extract_strided_slice %16 {offsets = [0, 16], sizes = [8, 8], strides = [1, 1]} : vector<8x32xbf16> to vector<8x8xbf16>
    %59 = vector.extract_strided_slice %18 {offsets = [0, 16], sizes = [8, 8], strides = [1, 1]} : vector<8x32xbf16> to vector<8x8xbf16>
    %cst_21 = arith.constant dense<0.000000e+00> : vector<8x8xf32>
    %60 = tpu.matmul %57, %58, %cst_21 {dimension_numbers = #tpu.dot_dimension_numbers<[1], [1], [0], [0], [0, 0, 1, 0], [], []>} : vector<8x8xbf16>, vector<8x8xbf16>, vector<8x8xf32> -> vector<8x8xf32>
    %61 = arith.addf %60, %20 : vector<8x8xf32>
    %cst_22 = arith.constant dense<0xFF800000> : vector<8xf32>
    %62 = vector.multi_reduction <maximumf>, %61, %cst_22 [1] : vector<8x8xf32> to vector<8xf32>
    %63 = vector.shape_cast %62 : vector<8xf32> to vector<8x1xf32>
    %64 = vector.broadcast %63 : vector<8x1xf32> to vector<8x8xf32>
    %65 = arith.subf %61, %64 : vector<8x8xf32>
    %66 = math.exp %65 : vector<8x8xf32>
    %cst_23 = arith.constant dense<0.000000e+00> : vector<8xf32>
    %67 = vector.multi_reduction <add>, %66, %cst_23 [1] : vector<8x8xf32> to vector<8xf32>
    %68 = vector.shape_cast %67 : vector<8xf32> to vector<8x1xf32>
    %69 = tpu.reciprocal %68 {approx = true} : vector<8x1xf32> -> vector<8x1xf32>
    %70 = vector.broadcast %69 : vector<8x1xf32> to vector<8x8xf32>
    %71 = arith.mulf %66, %70 : vector<8x8xf32>
    %72 = arith.truncf %71 : vector<8x8xf32> to vector<8x8xbf16>
    %cst_24 = arith.constant dense<0.000000e+00> : vector<8x8xf32>
    %73 = tpu.matmul %72, %59, %cst_24 {dimension_numbers = #tpu.dot_dimension_numbers<[1], [0], [0], [1], [0, 0, 1, 1], [], []>} : vector<8x8xbf16>, vector<8x8xbf16>, vector<8x8xf32> -> vector<8x8xf32>
    %c0_25 = arith.constant 0 : index
    %c16 = arith.constant 16 : index
    %74 = vector.load %arg16[%c0_25, %c16] : memref<8x32xf32, #tpu.memory_space<vmem>>, vector<8x8xf32>
    tpu.vector_store %arg16[%c0_25, %c16], %73 {strides = array<i32>} : memref<8x32xf32, #tpu.memory_space<vmem>>, vector<8x8xf32>,
    %75 = vector.extract_strided_slice %14 {offsets = [0, 24], sizes = [8, 8], strides = [1, 1]} : vector<8x32xbf16> to vector<8x8xbf16>
    %76 = vector.extract_strided_slice %16 {offsets = [0, 24], sizes = [8, 8], strides = [1, 1]} : vector<8x32xbf16> to vector<8x8xbf16>
    %77 = vector.extract_strided_slice %18 {offsets = [0, 24], sizes = [8, 8], strides = [1, 1]} : vector<8x32xbf16> to vector<8x8xbf16>
    %cst_26 = arith.constant dense<0.000000e+00> : vector<8x8xf32>
    %78 = tpu.matmul %75, %76, %cst_26 {dimension_numbers = #tpu.dot_dimension_numbers<[1], [1], [0], [0], [0, 0, 1, 0], [], []>} : vector<8x8xbf16>, vector<8x8xbf16>, vector<8x8xf32> -> vector<8x8xf32>
    %79 = arith.addf %78, %20 : vector<8x8xf32>
    %cst_27 = arith.constant dense<0xFF800000> : vector<8xf32>
    %80 = vector.multi_reduction <maximumf>, %79, %cst_27 [1] : vector<8x8xf32> to vector<8xf32>
    %81 = vector.shape_cast %80 : vector<8xf32> to vector<8x1xf32>
    %82 = vector.broadcast %81 : vector<8x1xf32> to vector<8x8xf32>
    %83 = arith.subf %79, %82 : vector<8x8xf32>
    %84 = math.exp %83 : vector<8x8xf32>
    %cst_28 = arith.constant dense<0.000000e+00> : vector<8xf32>
    %85 = vector.multi_reduction <add>, %84, %cst_28 [1] : vector<8x8xf32> to vector<8xf32>
    %86 = vector.shape_cast %85 : vector<8xf32> to vector<8x1xf32>
    %87 = tpu.reciprocal %86 {approx = true} : vector<8x1xf32> -> vector<8x1xf32>
    %88 = vector.broadcast %87 : vector<8x1xf32> to vector<8x8xf32>
    %89 = arith.mulf %84, %88 : vector<8x8xf32>
    %90 = arith.truncf %89 : vector<8x8xf32> to vector<8x8xbf16>
    %cst_29 = arith.constant dense<0.000000e+00> : vector<8x8xf32>
    %91 = tpu.matmul %90, %77, %cst_29 {dimension_numbers = #tpu.dot_dimension_numbers<[1], [0], [0], [1], [0, 0, 1, 1], [], []>} : vector<8x8xbf16>, vector<8x8xbf16>, vector<8x8xf32> -> vector<8x8xf32>
    %c0_30 = arith.constant 0 : index
    %c24 = arith.constant 24 : index
    %92 = vector.load %arg16[%c0_30, %c24] : memref<8x32xf32, #tpu.memory_space<vmem>>, vector<8x8xf32>
    tpu.vector_store %arg16[%c0_30, %c24], %91 {strides = array<i32>} : memref<8x32xf32, #tpu.memory_space<vmem>>, vector<8x8xf32>,
    %c0_31 = arith.constant 0 : index
    %c0_32 = arith.constant 0 : index
    %93 = vector.load %arg16[%c0_31, %c0_32] : memref<8x32xf32, #tpu.memory_space<vmem>>, vector<8x32xf32>
    %94 = arith.truncf %93 : vector<8x32xf32> to vector<8x32xbf16>
    %c0_33 = arith.constant 0 : index
    %c0_34 = arith.constant 0 : index
    %95 = vector.load %arg5[%c0_33, %c0_34] : memref<32x32xbf16, #tpu.memory_space<vmem>>, vector<32x32xbf16>
    %cst_35 = arith.constant dense<0.000000e+00> : vector<8x32xf32>
    %96 = tpu.matmul %94, %95, %cst_35 {dimension_numbers = #tpu.dot_dimension_numbers<[1], [0], [0], [1], [0, 0, 1, 1], [], []>} : vector<8x32xbf16>, vector<32x32xbf16>, vector<8x32xf32> -> vector<8x32xf32>
    %c0_36 = arith.constant 0 : index
    %c0_37 = arith.constant 0 : index
    %97 = vector.load %arg6[%c0_36, %c0_37] : memref<1x32xbf16, #tpu.memory_space<vmem>>, vector<1x32xbf16>
    %98 = arith.extf %97 : vector<1x32xbf16> to vector<1x32xf32>
    %99 = vector.broadcast %98 : vector<1x32xf32> to vector<8x32xf32>
    %100 = arith.addf %96, %99 : vector<8x32xf32>
    %101 = arith.addf %100, %1 : vector<8x32xf32>
    %c0_38 = arith.constant 0 : index
    %c0_39 = arith.constant 0 : index
    %102 = vector.load %arg7[%c0_38, %c0_39] : memref<1x32xf32, #tpu.memory_space<vmem>>, vector<1x32xf32>
    %c0_40 = arith.constant 0 : index
    %c0_41 = arith.constant 0 : index
    %103 = vector.load %arg8[%c0_40, %c0_41] : memref<1x32xf32, #tpu.memory_space<vmem>>, vector<1x32xf32>
    %cst_42 = arith.constant dense<0.000000e+00> : vector<8xf32>
    %104 = vector.multi_reduction <add>, %101, %cst_42 [1] : vector<8x32xf32> to vector<8xf32>
    %105 = vector.shape_cast %104 : vector<8xf32> to vector<8x1xf32>
    %cst_43 = arith.constant 3.200000e+01 : f32
    %106 = vector.broadcast %cst_43 : f32 to vector<8x1xf32>
    %107 = arith.divf %105, %106 : vector<8x1xf32>
    %108 = vector.broadcast %107 : vector<8x1xf32> to vector<8x32xf32>
    %109 = arith.subf %101, %108 : vector<8x32xf32>
    %110 = arith.mulf %109, %109 : vector<8x32xf32>
    %cst_44 = arith.constant dense<0.000000e+00> : vector<8xf32>
    %111 = vector.multi_reduction <add>, %110, %cst_44 [1] : vector<8x32xf32> to vector<8xf32>
    %112 = vector.shape_cast %111 : vector<8xf32> to vector<8x1xf32>
    %cst_45 = arith.constant 3.200000e+01 : f32
    %113 = vector.broadcast %cst_45 : f32 to vector<8x1xf32>
    %114 = arith.divf %112, %113 : vector<8x1xf32>
    %115 = vector.broadcast %107 : vector<8x1xf32> to vector<8x32xf32>
    %116 = arith.subf %101, %115 : vector<8x32xf32>
    %cst_46 = arith.constant 9.99999996E-13 : f32
    %117 = vector.broadcast %cst_46 : f32 to vector<8x1xf32>
    %118 = arith.addf %114, %117 : vector<8x1xf32>
    %119 = math.rsqrt %118 : vector<8x1xf32>
    %120 = vector.broadcast %119 : vector<8x1xf32> to vector<8x32xf32>
    %121 = arith.mulf %116, %120 : vector<8x32xf32>
    %122 = vector.broadcast %102 : vector<1x32xf32> to vector<8x32xf32>
    %123 = arith.mulf %121, %122 : vector<8x32xf32>
    %124 = vector.broadcast %103 : vector<1x32xf32> to vector<8x32xf32>
    %125 = arith.addf %123, %124 : vector<8x32xf32>
    %126 = arith.truncf %125 : vector<8x32xf32> to vector<8x32xbf16>
    %c0_47 = arith.constant 0 : index
    %c0_48 = arith.constant 0 : index
    %127 = vector.load %arg9[%c0_47, %c0_48] : memref<32x64xbf16, #tpu.memory_space<vmem>>, vector<32x64xbf16>
    %cst_49 = arith.constant dense<0.000000e+00> : vector<8x64xf32>
    %128 = tpu.matmul %126, %127, %cst_49 {dimension_numbers = #tpu.dot_dimension_numbers<[1], [0], [0], [1], [0, 0, 1, 1], [], []>} : vector<8x32xbf16>, vector<32x64xbf16>, vector<8x64xf32> -> vector<8x64xf32>
    %c0_50 = arith.constant 0 : index
    %c0_51 = arith.constant 0 : index
    %129 = vector.load %arg10[%c0_50, %c0_51] : memref<1x64xbf16, #tpu.memory_space<vmem>>, vector<1x64xbf16>
    %130 = arith.extf %129 : vector<1x64xbf16> to vector<1x64xf32>
    %131 = vector.broadcast %130 : vector<1x64xf32> to vector<8x64xf32>
    %132 = arith.addf %128, %131 : vector<8x64xf32>
    %133 = arith.mulf %132, %132 : vector<8x64xf32>
    %134 = arith.mulf %132, %133 : vector<8x64xf32>
    %cst_52 = arith.constant 4.471500e-02 : f32
    %135 = vector.broadcast %cst_52 : f32 to vector<8x64xf32>
    %136 = arith.mulf %135, %134 : vector<8x64xf32>
    %137 = arith.addf %132, %136 : vector<8x64xf32>
    %cst_53 = arith.constant 0.797884583 : f32
    %138 = vector.broadcast %cst_53 : f32 to vector<8x64xf32>
    %139 = arith.mulf %138, %137 : vector<8x64xf32>
    %140 = math.tanh %139 : vector<8x64xf32>
    %cst_54 = arith.constant 1.000000e+00 : f32
    %141 = vector.broadcast %cst_54 : f32 to vector<8x64xf32>
    %142 = arith.addf %141, %140 : vector<8x64xf32>
    %cst_55 = arith.constant 5.000000e-01 : f32
    %143 = vector.broadcast %cst_55 : f32 to vector<8x64xf32>
    %144 = arith.mulf %143, %142 : vector<8x64xf32>
    %145 = arith.mulf %132, %144 : vector<8x64xf32>
    %146 = arith.truncf %145 : vector<8x64xf32> to vector<8x64xbf16>
    %c0_56 = arith.constant 0 : index
    %c0_57 = arith.constant 0 : index
    %147 = vector.load %arg11[%c0_56, %c0_57] : memref<64x32xbf16, #tpu.memory_space<vmem>>, vector<64x32xbf16>
    %cst_58 = arith.constant dense<0.000000e+00> : vector<8x32xf32>
    %148 = tpu.matmul %146, %147, %cst_58 {dimension_numbers = #tpu.dot_dimension_numbers<[1], [0], [0], [1], [0, 0, 1, 1], [], []>} : vector<8x64xbf16>, vector<64x32xbf16>, vector<8x32xf32> -> vector<8x32xf32>
    %c0_59 = arith.constant 0 : index
    %c0_60 = arith.constant 0 : index
    %149 = vector.load %arg12[%c0_59, %c0_60] : memref<1x32xbf16, #tpu.memory_space<vmem>>, vector<1x32xbf16>
    %150 = arith.extf %149 : vector<1x32xbf16> to vector<1x32xf32>
    %151 = vector.broadcast %150 : vector<1x32xf32> to vector<8x32xf32>
    %152 = arith.addf %148, %151 : vector<8x32xf32>
    %153 = arith.addf %152, %125 : vector<8x32xf32>
    %c0_61 = arith.constant 0 : index
    %c0_62 = arith.constant 0 : index
    %154 = vector.load %arg13[%c0_61, %c0_62] : memref<1x32xf32, #tpu.memory_space<vmem>>, vector<1x32xf32>
    %c0_63 = arith.constant 0 : index
    %c0_64 = arith.constant 0 : index
    %155 = vector.load %arg14[%c0_63, %c0_64] : memref<1x32xf32, #tpu.memory_space<vmem>>, vector<1x32xf32>
    %cst_65 = arith.constant dense<0.000000e+00> : vector<8xf32>
    %156 = vector.multi_reduction <add>, %153, %cst_65 [1] : vector<8x32xf32> to vector<8xf32>
    %157 = vector.shape_cast %156 : vector<8xf32> to vector<8x1xf32>
    %cst_66 = arith.constant 3.200000e+01 : f32
    %158 = vector.broadcast %cst_66 : f32 to vector<8x1xf32>
    %159 = arith.divf %157, %158 : vector<8x1xf32>
    %160 = vector.broadcast %159 : vector<8x1xf32> to vector<8x32xf32>
    %161 = arith.subf %153, %160 : vector<8x32xf32>
    %162 = arith.mulf %161, %161 : vector<8x32xf32>
    %cst_67 = arith.constant dense<0.000000e+00> : vector<8xf32>
    %163 = vector.multi_reduction <add>, %162, %cst_67 [1] : vector<8x32xf32> to vector<8xf32>
    %164 = vector.shape_cast %163 : vector<8xf32> to vector<8x1xf32>
    %cst_68 = arith.constant 3.200000e+01 : f32
    %165 = vector.broadcast %cst_68 : f32 to vector<8x1xf32>
    %166 = arith.divf %164, %165 : vector<8x1xf32>
    %167 = vector.broadcast %159 : vector<8x1xf32> to vector<8x32xf32>
    %168 = arith.subf %153, %167 : vector<8x32xf32>
    %cst_69 = arith.constant 9.99999996E-13 : f32
    %169 = vector.broadcast %cst_69 : f32 to vector<8x1xf32>
    %170 = arith.addf %166, %169 : vector<8x1xf32>
    %171 = math.rsqrt %170 : vector<8x1xf32>
    %172 = vector.broadcast %171 : vector<8x1xf32> to vector<8x32xf32>
    %173 = arith.mulf %168, %172 : vector<8x32xf32>
    %174 = vector.broadcast %154 : vector<1x32xf32> to vector<8x32xf32>
    %175 = arith.mulf %173, %174 : vector<8x32xf32>
    %176 = vector.broadcast %155 : vector<1x32xf32> to vector<8x32xf32>
    %177 = arith.addf %175, %176 : vector<8x32xf32>
    %c0_70 = arith.constant 0 : index
    %c0_71 = arith.constant 0 : index
    %c0_72 = arith.constant 0 : index
    %178 = vector.load %arg15[%c0_70, %c0_71, %c0_72] : memref<1x8x32xf32, #tpu.memory_space<vmem>>, vector<1x8x32xf32>
    %179 = vector.shape_cast %178 : vector<1x8x32xf32> to vector<8x32xf32>
    %180 = vector.shape_cast %177 : vector<8x32xf32> to vector<1x8x32xf32>
    tpu.vector_store %arg15[%c0_70, %c0_71, %c0_72], %180 {strides = array<i32>} : memref<1x8x32xf32, #tpu.memory_space<vmem>>, vector<1x8x32xf32>,
    return
  }
  func.func @transform_0(%arg0: i32) -> (i32, i32, i32) {
    %c0_i32 = arith.constant 0 : i32
    %c0_i32_0 = arith.constant 0 : i32
    %c0_i32_1 = arith.constant 0 : i32
    return %arg0, %c0_i32, %c0_i32_0 : i32, i32, i32
  }
  func.func @transform_1(%arg0: i32) -> (i32, i32, i32) {
    %c0_i32 = arith.constant 0 : i32
    %c0_i32_0 = arith.constant 0 : i32
    %c0_i32_1 = arith.constant 0 : i32
    return %arg0, %c0_i32, %c0_i32_0 : i32, i32, i32
  }
  func.func @transform_2(%arg0: i32) -> (i32, i32) {
    %c0_i32 = arith.constant 0 : i32
    %c0_i32_0 = arith.constant 0 : i32
    %c0_i32_1 = arith.constant 0 : i32
    return %c0_i32, %c0_i32_0 : i32, i32
  }
  func.func @transform_3(%arg0: i32) -> (i32, i32) {
    %c0_i32 = arith.constant 0 : i32
    %c0_i32_0 = arith.constant 0 : i32
    %c0_i32_1 = arith.constant 0 : i32
    return %c0_i32, %c0_i32_0 : i32, i32
  }
  func.func @transform_4(%arg0: i32) -> (i32, i32) {
    %c0_i32 = arith.constant 0 : i32
    %c0_i32_0 = arith.constant 0 : i32
    %c0_i32_1 = arith.constant 0 : i32
    return %c0_i32, %c0_i32_0 : i32, i32
  }
  func.func @transform_5(%arg0: i32) -> (i32, i32) {
    %c0_i32 = arith.constant 0 : i32
    %c0_i32_0 = arith.constant 0 : i32
    %c0_i32_1 = arith.constant 0 : i32
    return %c0_i32, %c0_i32_0 : i32, i32
  }
  func.func @transform_6(%arg0: i32) -> (i32, i32) {
    %c0_i32 = arith.constant 0 : i32
    %c0_i32_0 = arith.constant 0 : i32
    %c0_i32_1 = arith.constant 0 : i32
    return %c0_i32, %c0_i32_0 : i32, i32
  }
  func.func @transform_7(%arg0: i32) -> (i32, i32) {
    %c0_i32 = arith.constant 0 : i32
    %c0_i32_0 = arith.constant 0 : i32
    %c0_i32_1 = arith.constant 0 : i32
    return %c0_i32, %c0_i32_0 : i32, i32
  }
  func.func @transform_8(%arg0: i32) -> (i32, i32) {
    %c0_i32 = arith.constant 0 : i32
    %c0_i32_0 = arith.constant 0 : i32
    %c0_i32_1 = arith.constant 0 : i32
    return %c0_i32, %c0_i32_0 : i32, i32
  }
  func.func @transform_9(%arg0: i32) -> (i32, i32) {
    %c0_i32 = arith.constant 0 : i32
    %c0_i32_0 = arith.constant 0 : i32
    %c0_i32_1 = arith.constant 0 : i32
    return %c0_i32, %c0_i32_0 : i32, i32
  }
  func.func @transform_10(%arg0: i32) -> (i32, i32) {
    %c0_i32 = arith.constant 0 : i32
    %c0_i32_0 = arith.constant 0 : i32
    %c0_i32_1 = arith.constant 0 : i32
    return %c0_i32, %c0_i32_0 : i32, i32
  }
  func.func @transform_11(%arg0: i32) -> (i32, i32) {
    %c0_i32 = arith.constant 0 : i32
    %c0_i32_0 = arith.constant 0 : i32
    %c0_i32_1 = arith.constant 0 : i32
    return %c0_i32, %c0_i32_0 : i32, i32
  }
  func.func @transform_12(%arg0: i32) -> (i32, i32) {
    %c0_i32 = arith.constant 0 : i32
    %c0_i32_0 = arith.constant 0 : i32
    %c0_i32_1 = arith.constant 0 : i32
    return %c0_i32, %c0_i32_0 : i32, i32
  }
  func.func @transform_13(%arg0: i32) -> (i32, i32) {
    %c0_i32 = arith.constant 0 : i32
    %c0_i32_0 = arith.constant 0 : i32
    %c0_i32_1 = arith.constant 0 : i32
    return %c0_i32, %c0_i32_0 : i32, i32
  }
  func.func @transform_14(%arg0: i32) -> (i32, i32, i32) {
    %c0_i32 = arith.constant 0 : i32
    %c0_i32_0 = arith.constant 0 : i32
    %c0_i32_1 = arith.constant 0 : i32
    return %arg0, %c0_i32, %c0_i32_0 : i32, i32, i32
  }
}

</mosaic_0001>

<bundles_post_ra>
// kernel: tpu_custom_call.1
= control target key start
LH: loop header
LB: loop body
LE: loop exit
PB: predicated region body
PF: predicated region fallthrough
CT: control target
= control target key end

     0   :  { %s1771_s0 = inlined_call_operand.vmem [shape: f32[2,8,32], index: 0, kind: input, shape index: {}]   ;;  %s1772_s1 = inlined_call_operand.hbm [shape: f32[2,1,8], index: 1, kind: input, shape index: {}]   ;;  %s1773_s2 = inlined_call_operand.vmem [shape: bf16[32,96], index: 2, kind: input, shape index: {}]   ;;  %s1774_s3 = inlined_call_operand.vmem [shape: bf16[1,96], index: 3, kind: input, shape index: {}]   ;;  %s1775_s4 = inlined_call_operand.vmem [shape: bf16[32,32], index: 4, kind: input, shape index: {}]   ;;  %s1776_s5 = inlined_call_operand.vmem [shape: bf16[1,32], index: 5, kind: input, shape index: {}]   ;;  %s1777_s6 = inlined_call_operand.vmem [shape: f32[1,32], index: 6, kind: input, shape index: {}]   ;;  %s1778_s7 = inlined_call_operand.vmem [shape: f32[1,32], index: 7, kind: input, shape index: {}]   ;;  %s1779_s8 = inlined_call_operand.hbm [shape: bf16[32,64], index: 8, kind: input, shape index: {}]   ;;  %s1780_s9 = inlined_call_operand.vmem [shape: bf16[1,64], index: 9, kind: input, shape index: {}]   ;;  %s1781_s10 = inlined_call_operand.vmem [shape: bf16[64,32], index: 10, kind: input, shape index: {}]   ;;  %s1782_s11 = inlined_call_operand.vmem [shape: bf16[1,32], index: 11, kind: input, shape index: {}]   ;;  %s1783_s12 = inlined_call_operand.vmem [shape: f32[1,32], index: 12, kind: input, shape index: {}]   ;;  %s1784_s13 = inlined_call_operand.vmem [shape: f32[1,32], index: 13, kind: input, shape index: {}]   ;;  %s1785_s14 = inlined_call_operand.hbm [shape: f32[2,8,32], index: 14, kind: output, shape index: {}]  }
   0x1   :  { %1791 = sst [smem:[#allocation17_spill]] %s1779_s8 }
   0x2   :  { %1792 = sst [smem:[#allocation18_spill]] %s1784_s13 }
   0x3   :  { %19 = vsyncpa [#allocation4], 0 }
   0x4   :  { %21 = vsyncpa [#allocation4 + $0x1], 0 }
   0x5   :  { %22 = vsyncpa [#allocation7], 0 }
   0x6   :  { %23 = vsyncpa [#allocation5], 0 }
   0x7   :  { %25 = vsyncpa [#allocation5 + $0x1], 0  ;;  %s1525_s29 = smov 0   ;;  %s1527_s30 = smov 0  }
   0x8   :  { %s1529_s15 = smov 0   ;;  %s1531_s16 = smov 0  }
   0x9 LB: > { %1793 = sst [smem:[#allocation12_spill]] %s1418_s29  ;;  %s1549_s20 = sadd.s32 4294967295, %s1430_s16   ;;  %s1430_s16 = sphi %s1531_s16, %s1808_s16   ;;  %s1426_s15 = sphi %s1529_s15, %s1810_s15   ;;  %s1422_s30 = sphi %s1527_s30, %s1812_s30   ;;  %s1418_s29 = sphi %s1525_s29, %s1811_s29  }
   0xa   : > { %1794 = sst [smem:[#allocation13_spill]] %s1426_s15  ;;  %p1124_p0 = scmp.ge.s32.totalorder %s1430_s16, 1 }
   0xb   : > { %1795 = sst [smem:[#allocation14_spill]] %s1430_s16  ;;  %p78_p1 = scmp.eq.s32.totalorder %s1549_s20, 0 }
   0xc   : > { %s1796_s8 = sld [smem:[#allocation17_spill]]  ;;  %p366_p2 = scmp.lt.s32.totalorder %s1430_s16, 3 }
   0xd   : > { %s1432_s22 = smov [#allocation6]   ;;  %s1433_s24 = smov 64  }
   0xe   : > { %p1554_p3 = pnand %p1124_p0, %p366_p2  ;;  %s397_s23 = sshll.u32 %s1432_s22, 4  ;;  %s398_s23 = int_to_ptr.vmem [resolvable:$true] %s397_s23 }
   0xf   : > { %s1434_s25 = smov 4   ;;  %s1123_s26 = sadd.s32 4294967294, %s1430_s16  }
  0x10   : > { %p1205_p4 = pneg %p1554_p3  ;;  %s1565_s27 = sadd.s32 1, %s1430_s16  }
  0x11   : > { %1798 = sst [smem:[#allocation15_spill]] %s1565_s27  ;;  %s64_s28 = sadd.s32 1, %s1426_s15 }
  0x12   : > { %s395_s19 = sshll.u32 %s1796_s8, 4  ;;  %p1206_p6 = pnand %p1205_p4, %p78_p1  ;;  %s396_s19 = int_to_ptr.hbm [resolvable:$true] %s395_s19 }
  0x13   : > { %s61_s17 = ssub.s32 %s1430_s16, %s1565_s27  ;;  %p71_p7 = scmp.ne.s32.totalorder %s1426_s15, %s1422_s30 }
  0x14   : > { %1208 = dma.hbm_to_vmem [thread:$0]  (!%p1206_p6), %s396_s19, 256, %s398_s23, [#allocation7], %s1433_s24, %s1433_s24, %s1434_s25  }
  0x15   : > { %p62_p8 = scmp.eq.s32.totalorder %s61_s17, 0  ;;  %p72_p9 = scmp.eq.s32.totalorder %s1430_s16, 0 }
  0x16   : > { %p77_p10 = scmp.ne.s32.totalorder %s1422_s30, %s1418_s29  ;;  %p353_p11 = scmp.eq.s32.totalorder %s1549_s20, 1 }
  0x17   : > { %s1577_s18 = scalar_select %p62_p8, %s1426_s15, %s64_s28  }
  0x18   : > { %p1581_p12 = por %p78_p1, %p77_p10  ;;  %p1585_p13 = por %p353_p11, %p71_p7 }
  0x19   : > { %1799 = sst [smem:[#allocation16_spill]] %s1577_s18  ;;  %p359_p0 = scmp.eq.s32.totalorder %s1123_s26, 1 }
  0x1a   : > { %p73_p2 = por %p72_p9, %p71_p7  ;;  %s433_s23 = sand.u32 1, %s1426_s15  }
  0x1b   : > { %p1590_p4 = por %p359_p0, %p77_p10  ;;  %p1218_p6 = scmp.lt.s32.totalorder %s1430_s16, 2 }
  0x1c   : > { %s439_s17 = scalar_lea.hbm %s1772_s1, %s1430_s16  ;;  %s436_s18 = scalar_lea.vmem [#allocation3], %s433_s23 }
  0x1d   : > { %s441_s8 = sshll.u32 %s439_s17, 4  ;;  %s443_s27 = sshll.u32 %s436_s18, 4  ;;  %s442_s8 = int_to_ptr.hbm [resolvable:$true] %s441_s8  ;;  %s444_s27 = int_to_ptr.vmem [resolvable:$true] %s443_s27 }
  0x1e   : > { %p1599_p8 = pnand %p1218_p6, %p73_p2  ;;  %s434_s26 = scalar_lea.sflag [#allocation4], %s433_s23 }
  0x1f   : > { %s1330_s15 = sshra.s32 %s442_s8, 4  ;;  %s1337_s18 = scalar_lea.hbm %s1772_s1, 2  ;;  %s1331_s15 = int_to_ptr.hbm [resolvable:$true] %s1330_s15 }
  0x20   : > { %s1332_s13 = scalar_lea.hbm %s1331_s15, 1  ;;  %p1334_p9 = pneg %p1599_p8 }
  0x21   : > { %p1333_p7 = scmp.ne.s32.totalorder %s1331_s15, %s1332_s13  ;;  %p1338_p0 = scmp.lt.s32.totalorder %s1331_s15, %s1772_s1 }
  0x22   : > { %p1339_p2 = scmp.lt.s32.totalorder %s1337_s18, %s1332_s13 }
  0x23   : > { %p1335_p10 = pnand %p1334_p9, %p1333_p7 }
  0x24   : > { %p1340_p6 = por %p1339_p2, %p1338_p0 }
  0x25   : > { %p1336_p11 = pneg %p1335_p10 }
  0x27   : > { %p1341_p5 = pnand %p1340_p6, %p1336_p11 }
  0x29   : > { %1344 = shalt.err (!%p1341_p5)
}
  0x2a   : > { %1212 = dma.hbm_to_vmem [thread:$0]  (!%p1599_p8), %s442_s8, 16, %s444_s27, %s434_s26  }
  0x2b   : > { %452 = sbr.rel (%p1554_p3) target bundleno = 1964 (0x7ac), region = 76  ;;  %s1616_s23 = sand.u32 (!%p1554_p3), 1, %s1422_s30  }
  0x2c   : > { %s455_s25 = scalar_lea.sflag (!%p1554_p3), [#allocation4], %s1616_s23  ;;  %s457_s28 = scalar_lea.vmem (!%p1554_p3), [#allocation3], %s1616_s23 }
  0x30   : > { %1405 = dma.done.wait (%p1581_p12), %s455_s25, 16  }
  0x31   : > { %1407 = vsyncadd (%p1581_p12), %s455_s25, 4294967280 }
  0x32   : > { %1409 = dma.done.wait (%p78_p1), [#allocation7], 256  }
  0x33   : > { %1411 = vsyncadd (%p78_p1), [#allocation7], 4294967040  ;;  %p511_p3 = scmp.lt.s32.totalorder %s1549_s20, 1  ;;  %v1188_v0 = vld [vmem:[%s1773_s2 + $0x8] sm:$0xff]  ;;  %v1187_v1 = vld [vmem:[%s1773_s2] sm:$0xff]  ;;  %vm538_vm0 = vcmask 261120  }
  0x34   : > { %548 = vmatpush.bf16.msra.mxu0 %v1188_v0  ;;  %v523_v4 = vld [vmem:[%s1774_s3] sm:$0x1]  ;;  %s1435_s25 = smov 96   ;;  %s1438_s29 = smov 88   ;;  %vm566_vm1 = vcmask 64512   ;;  %vm603_vm2 = vcmask 1043456  }
  0x35   : > { %s512_s8 = scalar_select %p511_p3, %s1549_s20, 1  ;;  %v524_v5 = vunpack.c.l.bf16 %v523_v4  ;;  %v1271_v28 = vld [vmem:[%s457_s28] ss:$0 sm:$0xff]  ;;  %vm684_vm3 = vcmask 130112   ;;  %vm746_vm4 = vcmask 195712   ;;  %vm808_vm5 = vcmask 261312  }
  0x36   : > { %s1439_s15 = smov 80   ;;  %s1441_s21 = smov 112   ;;  %vm968_vm10 = vcmask 523264  }
  0x37   : > { %s1130_s13 = sshll.u32 %s512_s8, 3  ;;  %v525_v6 = vperm.slane %v524_v5, 0  ;;  %s1436_s8 = smov 104  }
  0x38   : > { %s514_s16 = scalar_lea.vmem %s1771_s0, %s1130_s13  ;;  %549 = vmatpush.bf16.msra.mxu0 %v1187_v1  ;;  %s1437_s13 = smov 120  }
  0x39   : > { %v1639_v2 = vld [vmem:[%s514_s16] sm:$0xff]  ;;  %s1440_s16 = smov 72   ;;  %s1442_s28 = smov 64  }
  0x3a   : > { %v518_v3 = vpack.c.bf16 %v1639_v2, %v1639_v2  ;;  %s1443_s27 = smov 40   ;;  %s1444_s22 = smov 56  }
  0x3b   : > { %s1445_s26 = smov 48   ;;  %s1446_s18 = smov 8  }
  0x3c   : > { %1139 = vmatmul.msk.bf16.vlgmr.msra.gmra.mxu0 %vm538_vm0, %v518_v3  ;;  %s1447_s17 = smov 16  }
  0xb9   : > { %v551_v7 = vpop.f32.mrf.mxu0 }
  0xba   : > { %v552_v8 = vadd.f32 %v551_v7, %v525_v6 }
  0xbc   : > { %v555_v9 = vmul.f32 0.35355338, %v552_v8  ;;  %v557_v10 = vpack.c.bf16 %v552_v8, %v552_v8 }
  0xbe   : > { %v556_v11 = vpack.c.bf16 %v555_v9, %v555_v9  ;;  %v562_v12 = vunpack.c.l.b16 %v557_v10 }
  0xc0   : > { %v1647_v13 = vpack.c.b16 %v562_v12, %v562_v12  ;;  %v622_v14 = vunpack.c.l.b16 %v556_v11 }
  0xc1   : > { %v553_v15 = vpop.f32.mrf.mxu0 }
  0xc2   : > { %564 = vrot.lane.b32.xlu0 %v1647_v13, %s1435_s25  ;;  %v623_v16 = vpack.c.b16 %v622_v14, %v622_v14  ;;  %s1448_s25 = smov 24  }
  0xc4   : > { %748 = vrot.lane.b32.xlu2 %v623_v16, %s1436_s8  ;;  %624 = vrot.lane.b32.xlu1 %v623_v16, %s1437_s13 }
  0xca   : > { %626 = vrot.lane.b32.xlu0 %v1647_v13, %s1438_s29 }
  0xcc   : > { %688 = vrot.lane.b32.xlu2 %v1647_v13, %s1439_s15  ;;  %750 = vrot.lane.b32.xlu1 %v1647_v13, %s1440_s16 }
  0xd2   : > { %686 = vrot.lane.b32.xlu0 %v623_v16, %s1441_s21  ;;  %s1804_s21 = sld [smem:[#allocation18_spill]] }
 0x11e   : > { %v749_v17 = vpop.permute.xlu2 %748 }
 0x126   : > { %v689_v18 = vpop.permute.xlu2 %688 }
 0x127   : > { %v694_v19 = vsel %vm566_vm1, %v689_v18, 0 }
 0x128   : > { %703 = vmatpush.bf16.xpose.msrb.mxu0 %v694_v19 }
 0x134   : > { %v565_v20 = vpop.permute.xlu0 %564 }
 0x135   : > { %v571_v21 = vsel %vm566_vm1, %v565_v20, 0 }
 0x136   : > { %580 = vmatpush.bf16.xpose.msra.mxu1 %v571_v21  ;;  %v625_v22 = vpop.permute.xlu1 %624 }
 0x13c   : > { %v627_v23 = vpop.permute.xlu0 %626 }
 0x13d   : > { %1140 = vmatmul.msk.bf16.vlgmr.msra.gmra.mxu1 %vm566_vm1, %v556_v11  ;;  %v632_v24 = vsel %vm566_vm1, %v627_v23, 0 }
 0x13e   : > { %641 = vmatpush.bf16.xpose.msra.mxu3 %v632_v24  ;;  %v751_v25 = vpop.permute.xlu1 %750 }
 0x13f   : > { %v756_v26 = vsel %vm566_vm1, %v751_v25, 0 }
 0x144   : > { %v687_v27 = vpop.permute.xlu0 %686 }
 0x145   : > { %1142 = vmatmul.msk.bf16.vlgmr.msra.gmra.mxu3 %vm566_vm1, %v625_v22  ;;  %1144 = vmatmul.msk.bf16.vlgmr.msrb.gmra.mxu0 %vm566_vm1, %v687_v27 }
 0x146   : > { %765 = vmatpush.bf16.xpose.msrb.mxu3 %v756_v26 }
 0x155   : > { %1146 = vmatmul.msk.bf16.vlgmr.msrb.gmra.mxu3 %vm566_vm1, %v749_v17 }
 0x1ba   : > { %v582_v29 = vpop.f32.mrf.mxu1 }
 0x1bb   : > { %v583_v30 = vadd.f32 %v1271_v28, %v582_v29 }
 0x1bd   : > { %v586_v31 = vsel %vm566_vm1, %v583_v30, -inf }
 0x1be   : > { %587 = vmax.xlane.f32.xlu1 %v586_v31 }
 0x1c2   : > { %v584_v32 = vpop.f32.mrf.mxu1  ;;  %v705_v33 = vpop.f32.mrf.mxu0 }
 0x1c3   : > { %v706_v38 = vadd.f32 %v1271_v28, %v705_v33 }
 0x1c5   : > { %v709_v40 = vsel %vm566_vm1, %v706_v38, -inf }
 0x1c8   : > { %v643_v34 = vpop.f32.mrf.mxu3 }
 0x1c9   : > { %v644_v35 = vadd.f32 %v1271_v28, %v643_v34  ;;  %v1190_v34 = vld [vmem:[%s1775_s4 + $0x8] sm:$0xff] }
 0x1ca   : > { %v707_v36 = vpop.f32.mrf.mxu0  ;;  %840 = vmatpush.bf16.msra.mxu0 %v1190_v34 }
 0x1cb   : > { %v647_v37 = vsel %vm566_vm1, %v644_v35, -inf }
 0x1cc   : > { %648 = vmax.xlane.f32.xlu2 %v647_v37 }
 0x1d0   : > { %v645_v39 = vpop.f32.mrf.mxu3 }
 0x1d4   : > { %710 = vmax.xlane.f32.xlu2 %v709_v40 }
 0x1d8   : > { %v767_v41 = vpop.f32.mrf.mxu3 }
 0x1d9   : > { %v768_v42 = vadd.f32 %v1271_v28, %v767_v41  ;;  %v816_v41 = vld [vmem:[%s1776_s5] sm:$0x1] }
 0x1db   : > { %v771_v43 = vsel %vm566_vm1, %v768_v42, -inf }
 0x1dc   : > { %772 = vmax.xlane.f32.xlu0 %v771_v43 }
 0x1e0   : > { %v769_v44 = vpop.f32.mrf.mxu3 }
 0x1ec   : > { %598 = vrot.lane.b32.xlu2 %v1647_v13, %s1442_s28 }
 0x1f4   : > { %783 = vrot.lane.b32.xlu2 %v1647_v13, %s1443_s27 }
 0x231   : > { %v588_v45 = vpop.xlane.xlu1 %587 }
 0x232   : > { %v589_v46 = vsub.f32 %v583_v30, %v588_v45 }
 0x234   : > { %v590_v47 = vmul.f32 1.442695, %v589_v46 }
 0x236   : > { %1276 = vpow2.f32 %v590_v47 }
 0x23c   : > { %v1277_v48 = vpop.eup %1276 }
 0x23d   : > { %v592_v49 = vsel %vm566_vm1, %v1277_v48, 0.0 }
 0x23e   : > { %593 = vadd.xlane.f32.xlu1 %v592_v49  ;;  %v1449_v49 = vmov 32.0  }
 0x23f   : > { %v649_v50 = vpop.xlane.xlu2 %648 }
 0x240   : > { %v650_v53 = vsub.f32 %v644_v35, %v649_v50  ;;  %v1189_v35 = vld [vmem:[%s1775_s4] sm:$0xff] }
 0x241   : > { %841 = vmatpush.bf16.msra.mxu0 %v1189_v35  ;;  %v941_v35 = vld [vmem:[%s1782_s11] sm:$0x1] }
 0x242   : > { %v651_v55 = vmul.f32 1.442695, %v650_v53 }
 0x247   : > { %v711_v51 = vpop.xlane.xlu2 %710 }
 0x248   : > { %v712_v52 = vsub.f32 %v706_v38, %v711_v51 }
 0x24a   : > { %v713_v54 = vmul.f32 1.442695, %v712_v52 }
 0x24c   : > { %1278 = vpow2.f32 %v713_v54 }
 0x24d   : > { %1280 = vpow2.f32 %v651_v55 }
 0x24f   : > { %v599_v56 = vpop.permute.xlu2 %598  ;;  %v773_v57 = vpop.xlane.xlu0 %772 }
 0x250   : > { %v605_v58 = vsel %vm603_vm2, %v599_v56, 0  ;;  %v774_v60 = vsub.f32 %v768_v42, %v773_v57  ;;  %v817_v42 = vunpack.c.l.bf16 %v816_v41 }
 0x251   : > { %614 = vmatpush.bf16.msra.mxu2 %v605_v58 }
 0x252   : > { %v1279_v59 = vpop.eup %1278  ;;  %v775_v62 = vmul.f32 1.442695, %v774_v60  ;;  %v818_v43 = vperm.slane %v817_v42, 0  ;;  %v1192_v60 = vld [vmem:[#allocation6 + $0x8] sm:$0xff] }
 0x253   : > { %v715_v61 = vsel %vm566_vm1, %v1279_v59, 0.0  ;;  %v1281_v63 = vpop.eup %1280 }
 0x254   : > { %716 = vadd.xlane.f32.xlu0 %v715_v61  ;;  %1282 = vpow2.f32 %v775_v62  ;;  %v653_v0 = vsel %vm566_vm1, %v1281_v63, 0.0  ;;  %v1191_v61 = vld [vmem:[#allocation6] sm:$0xff] }
 0x257   : > { %659 = vrot.lane.b32.xlu1 %v1647_v13, %s1444_s22  ;;  %v784_v9 = vpop.permute.xlu2 %783  ;;  %s1020_s22 = scalar_lea.sflag [#allocation5], %s1616_s23 }
 0x258   : > { %v789_v12 = vsel %vm603_vm2, %v784_v9, 0 }
 0x25a   : > { %v1283_v1 = vpop.eup %1282 }
 0x25b   : > { %v777_v3 = vsel %vm566_vm1, %v1283_v1, 0.0 }
 0x25c   : > { %654 = vadd.xlane.f32.xlu0 %v653_v0 }
 0x264   : > { %778 = vadd.xlane.f32.xlu0 %v777_v3 }
 0x278   : > { %721 = vrot.lane.b32.xlu0 %v1647_v13, %s1445_s26  ;;  %s1129_s26 = sshll.u32 %s1616_s23, 3 }
 0x2b1   : > { %v594_v4 = vpop.xlane.xlu1 %593 }
 0x2b2   : > { %1284 = vrcp.f32 %v594_v4 }
 0x2b8   : > { %v1285_v5 = vpop.eup %1284 }
 0x2b9   : > { %v596_v6 = vmul.f32 %v1285_v5, %v1277_v48 }
 0x2bb   : > { %v597_v7 = vpack.c.bf16 %v596_v6, %v596_v6 }
 0x2bd   : > { %1141 = vmatmul.msk.bf16.vlgmr.msra.gmra.mxu2 %vm566_vm1, %v597_v7 }
 0x2c7   : > { %v717_v8 = vpop.xlane.xlu0 %716 }
 0x2c9   : > { %v660_v10 = vpop.permute.xlu1 %659 }
 0x2ca   : > { %v665_v11 = vsel %vm603_vm2, %v660_v10, 0  ;;  %v1273_v10 = vld [vmem:[%s1778_s7] ss:$0 sm:$0xff] }
 0x2cb   : > { %674 = vmatpush.bf16.msrb.mxu2 %v665_v11 }
 0x2cf   : > { %798 = vmatpush.bf16.msra.mxu2 %v789_v12  ;;  %v655_v14 = vpop.xlane.xlu0 %654 }
 0x2d0   : > { %1286 = vrcp.f32 %v655_v14 }
 0x2d6   : > { %v1287_v15 = vpop.eup %1286 }
 0x2d7   : > { %v657_v13 = vmul.f32 %v1287_v15, %v1281_v63  ;;  %v779_v16 = vpop.xlane.xlu0 %778 }
 0x2d8   : > { %1288 = vrcp.f32 %v779_v16  ;;  %v1195_v16 = vld [vmem:[%s1781_s10 + $0x10] sm:$0xff] }
 0x2d9   : > { %v658_v17 = vpack.c.bf16 %v657_v13, %v657_v13  ;;  %1290 = vrcp.f32 %v717_v8  ;;  %v1272_v8 = vld [vmem:[%s1777_s6] ss:$0 sm:$0xff]  ;;  %v1196_v13 = vld [vmem:[%s1781_s10 + $0x18] sm:$0xff] }
 0x2da   : > { %1292 = vrcp.f32 %v1449_v49  ;;  %976 = vmatpush.bf16.msra.mxu3 %v1196_v13 }
 0x2db   : > { %1143 = vmatmul.msk.bf16.vlgmr.msrb.gmra.mxu2 %vm566_vm1, %v658_v17  ;;  %v1194_v17 = vld [vmem:[%s1781_s10 + $0x8] sm:$0xff] }
 0x2de   : > { %v1289_v18 = vpop.eup %1288  ;;  %977 = vmatpush.bf16.msra.mxu3 %v1195_v16 }
 0x2df   : > { %v781_v19 = vmul.f32 %v1289_v18, %v1283_v1  ;;  %v1291_v20 = vpop.eup %1290  ;;  %v892_v18 = vld [vmem:[%s1780_s9] sm:$0x1] }
 0x2e0   : > { %v719_v21 = vmul.f32 %v1291_v20, %v1279_v59  ;;  %v1293_v50 = vpop.eup %1292  ;;  %v893_v20 = vunpack.c.l.bf16 %v892_v18 }
 0x2e1   : > { %v782_v22 = vpack.c.bf16 %v781_v19, %v781_v19  ;;  %v854_v51 = vmul.f32 32.0, %v1293_v50  ;;  %vm858_vm6 = vweird.f32 %v1293_v50  ;;  %v1193_v19 = vld [vmem:[%s1781_s10] sm:$0xff] }
 0x2e2   : > { %v720_v25 = vpack.c.bf16 %v719_v21, %v719_v21  ;;  %978 = vmatpush.bf16.msra.mxu3 %v1194_v17  ;;  %v894_v21 = vperm.slane %v893_v20, 0 }
 0x2e3   : > { %v855_v52 = vsub.f32 1.0, %v854_v51 }
 0x2e5   : > { %v856_v53 = vmul.f32 %v1293_v50, %v855_v52 }
 0x2e6   : > { %979 = vmatpush.bf16.msra.mxu3 %v1193_v19 }
 0x2e7   : > { %v857_v54 = vadd.f32 %v1293_v50, %v856_v53 }
 0x2e9   : > { %v1696_v55 = vsel %vm858_vm6, %v1293_v50, %v857_v54 }
 0x2ea   : > { %v722_v23 = vpop.permute.xlu0 %721 }
 0x2eb   : > { %1147 = vmatmul.msk.bf16.vlgmr.msra.gmra.mxu2 %vm566_vm1, %v782_v22  ;;  %v727_v24 = vsel %vm603_vm2, %v722_v23, 0 }
 0x2ec   : > { %736 = vmatpush.bf16.msrb.mxu1 %v727_v24 }
 0x2ef   : > { %1145 = vmatmul.msk.bf16.vlgmr.msrb.gmra.mxu1 %vm566_vm1, %v720_v25 }
 0x2f0   : > { %916 = vmatpush.bf16.msra.mxu1 %v1192_v60 }
 0x2f4   : > { %917 = vmatpush.bf16.msra.mxu1 %v1191_v61 }
 0x340   : > { %v616_v26 = vpop.f32.mrf.mxu2 }
 0x341   : > { %620 = vst.msk [vmem:[#allocation2] sm:$0xff] %vm566_vm1, %v616_v26 }
 0x348   : > { %v618_v27 = vpop.f32.mrf.mxu2 }
 0x35e   : > { %v676_v28 = vpop.f32.mrf.mxu2 }
 0x35f   : > { %681 = vrot.lane.b32.xlu1 %v676_v28, %s1446_s18  ;;  %s1184_s18 = sshll.u32 %s1549_s20, 3  ;;  %s510_s20 = scalar_lea.vmem [#allocation8], %s1129_s26 }
 0x360   : > { %s1030_s29 = scalar_lea.hbm %s1785_s14, %s1184_s18  ;;  %s1032_s28 = sshll.u32 %s510_s20, 4  ;;  %s1033_s28 = int_to_ptr.vmem [resolvable:$true] %s1032_s28 }
 0x361   : > { %s1034_s27 = sshll.u32 %s1030_s29, 4  ;;  %s1380_s26 = scalar_lea.hbm %s1785_s14, 16  ;;  %s1035_s27 = int_to_ptr.hbm [resolvable:$true] %s1034_s27 }
 0x366   : > { %v678_v29 = vpop.f32.mrf.mxu2 }
 0x36c   : > { %v738_v30 = vpop.f32.mrf.mxu1 }
 0x36d   : > { %743 = vrot.lane.b32.xlu2 %v738_v30, %s1447_s17  ;;  %s1374_s17 = sshra.s32 %s1035_s27, 4  ;;  %s1375_s17 = int_to_ptr.hbm [resolvable:$true] %s1374_s17 }
 0x36e   : > { %v800_v31 = vpop.f32.mrf.mxu2  ;;  %s1376_s18 = scalar_lea.hbm %s1375_s17, 8  ;;  %p1381_p8 = scmp.lt.s32.totalorder %s1375_s17, %s1785_s14 }
 0x36f   : > { %805 = vrot.lane.b32.xlu1 %v800_v31, %s1448_s25  ;;  %p1377_p1 = scmp.ne.s32.totalorder %s1375_s17, %s1376_s18  ;;  %p1382_p7 = scmp.lt.s32.totalorder %s1380_s26, %s1376_s18 }
 0x371   : > { %p1378_p5 = pnand %p1377_p1, %p1585_p13  ;;  %p1383_p9 = por %p1382_p7, %p1381_p8 }
 0x373   : > { %p1379_p12 = pneg %p1378_p5 }
 0x374   : > { %v740_v32 = vpop.f32.mrf.mxu1 }
 0x375   : > { %p1384_p10 = pnand %p1383_p9, %p1379_p12 }
 0x376   : > { %v802_v33 = vpop.f32.mrf.mxu2 }
 0x3c7   : > { %v744_v37 = vpop.permute.xlu2 %743 }
 0x3d1   : > { %v682_v36 = vpop.permute.xlu1 %681 }
 0x3d2   : > { %685 = vst.msk [vmem:[#allocation2] sm:$0xff] %vm684_vm3, %v682_v36  ;;  %v942_v36 = vunpack.c.l.bf16 %v941_v35 }
 0x3d3   : > { %747 = vst.msk [vmem:[#allocation2] sm:$0xff] %vm746_vm4, %v744_v37 }
 0x3d4   : > { %v943_v37 = vperm.slane %v942_v36, 0 }
 0x3e1   : > { %v806_v38 = vpop.permute.xlu1 %805 }
 0x3e2   : > { %809 = vst.msk [vmem:[#allocation2] sm:$0xff] %vm808_vm5, %v806_v38 }
 0x3e9   : > { %v810_v39 = vld [vmem:[#allocation2] sm:$0xff] }
 0x3ea   : > { %v811_v40 = vpack.c.bf16 %v810_v39, %v810_v39 }
 0x3ec   : > { %1156 = vmatmul.msk.bf16.vlgmr.msra.gmra.mxu0 %vm538_vm0, %v811_v40 }
 0x469   : > { %v843_v44 = vpop.f32.mrf.mxu0 }
 0x46a   : > { %v844_v45 = vadd.f32 %v843_v44, %v818_v43 }
 0x46c   : > { %v847_v46 = vadd.f32 %v844_v45, %v1639_v2 }
 0x46e   : > { %v850_v47 = vsel %vm538_vm0, %v847_v46, 0.0 }
 0x46f   : > { %851 = vadd.xlane.f32.xlu2 %v850_v47 }
 0x471   : > { %v845_v48 = vpop.f32.mrf.mxu0 }
 0x4e2   : > { %v852_v56 = vpop.xlane.xlu2 %851 }
 0x4e3   : > { %v860_v57 = vmul.f32 %v1696_v55, %v852_v56 }
 0x4e5   : > { %v861_v58 = vsub.f32 %v847_v46, %v860_v57 }
 0x4e7   : > { %v862_v59 = vmul.f32 %v861_v58, %v861_v58 }
 0x4e9   : > { %v863_v2 = vsel %vm538_vm0, %v862_v59, 0.0 }
 0x4ea   : > { %864 = vadd.xlane.f32.xlu1 %v863_v2  ;;  %v1275_v2 = vld [vmem:[%s1804_s21] ss:$0 sm:$0xff] }
 0x55d   : > { %v865_v62 = vpop.xlane.xlu1 %864 }
 0x55e   : > { %v866_v63 = vmul.f32 %v865_v62, %v1696_v55 }
 0x560   : > { %v867_v0 = vadd.f32 1e-12, %v866_v63 }
 0x562   : > { %1294 = vrsqrt.f32 %v867_v0  ;;  %vm874_vm8 = vweird.f32 %v867_v0 }
 0x568   : > { %v1295_v1 = vpop.eup %1294 }
 0x569   : > { %v869_v3 = vmul.f32 %v1295_v1, %v867_v0  ;;  %vm875_vm7 = vweird.f32 %v1295_v1 }
 0x56a   : > { %vm876_vm9 = vmor %vm874_vm8, %vm875_vm7 }
 0x56b   : > { %v870_v4 = vmul.f32 %v1295_v1, %v869_v3 }
 0x56d   : > { %v871_v5 = vmul.f32 0.5, %v870_v4 }
 0x56f   : > { %v872_v6 = vsub.f32 1.5, %v871_v5 }
 0x571   : > { %v873_v7 = vmul.f32 %v1295_v1, %v872_v6 }
 0x573   : > { %v877_v9 = vsel %vm876_vm9, %v1295_v1, %v873_v7 }
 0x574   : > { %v878_v11 = vmul.f32 %v877_v9, %v861_v58  ;;  %v1274_v58 = vld [vmem:[%s1783_s12] ss:$0 sm:$0xff] }
 0x576   : > { %v882_v12 = vmul.f32 %v1272_v8, %v878_v11 }
 0x578   : > { %v886_v14 = vadd.f32 %v1273_v10, %v882_v12 }
 0x57a   : > { %v887_v15 = vpack.c.bf16 %v886_v14, %v886_v14 }
 0x57c   : > { %1165 = vmatmul.msk.bf16.vlgmr.msra.gmra.mxu1 %vm538_vm0, %v887_v15 }
 0x5f9   : > { %v919_v22 = vpop.f32.mrf.mxu1 }
 0x5fa   : > { %v920_v23 = vadd.f32 %v919_v22, %v894_v21 }
 0x5fc   : > { %v923_v24 = vmul.f32 %v920_v23, %v920_v23 }
 0x5fe   : > { %v924_v25 = vmul.f32 %v923_v24, %v920_v23 }
 0x600   : > { %v925_v26 = vmul.f32 0.044715, %v924_v25 }
 0x601   : > { %v921_v27 = vpop.f32.mrf.mxu1 }
 0x602   : > { %v926_v28 = vadd.f32 %v925_v26, %v920_v23 }
 0x604   : > { %v927_v29 = vmul.f32 0.7978846, %v926_v28 }
 0x606   : > { %1296 = vtanh.f32 %v927_v29 }
 0x60c   : > { %v1297_v30 = vpop.eup %1296 }
 0x60d   : > { %v929_v31 = vadd.f32 1.0, %v1297_v30 }
 0x60f   : > { %v930_v32 = vmul.f32 0.5, %v929_v31 }
 0x611   : > { %v931_v33 = vmul.f32 %v930_v32, %v920_v23 }
 0x613   : > { %v932_v34 = vpack.c.bf16 %v931_v33, %v931_v33 }
 0x615   : > { %1182 = vmatmul.msk.bf16.vlgmr.msra.gmra.mxu3 %vm968_vm10, %v932_v34 }
 0x698   : > { %v981_v38 = vpop.f32.mrf.mxu3 }
 0x699   : > { %v982_v39 = vadd.f32 %v981_v38, %v943_v37 }
 0x69b   : > { %v985_v40 = vadd.f32 %v982_v39, %v886_v14 }
 0x69d   : > { %v988_v41 = vsel %vm538_vm0, %v985_v40, 0.0 }
 0x69e   : > { %989 = vadd.xlane.f32.xlu0 %v988_v41 }
 0x6a0   : > { %v983_v42 = vpop.f32.mrf.mxu3 }
 0x711   : > { %v990_v43 = vpop.xlane.xlu0 %989 }
 0x712   : > { %v991_v44 = vmul.f32 %v990_v43, %v1696_v55 }
 0x714   : > { %v992_v45 = vsub.f32 %v985_v40, %v991_v44 }
 0x716   : > { %v993_v46 = vmul.f32 %v992_v45, %v992_v45 }
 0x718   : > { %v994_v47 = vsel %vm538_vm0, %v993_v46, 0.0 }
 0x719   : > { %995 = vadd.xlane.f32.xlu2 %v994_v47 }
 0x78c   : > { %v996_v48 = vpop.xlane.xlu2 %995 }
 0x78d   : > { %v997_v49 = vmul.f32 %v996_v48, %v1696_v55 }
 0x78f   : > { %v998_v50 = vadd.f32 1e-12, %v997_v49 }
 0x791   : > { %1298 = vrsqrt.f32 %v998_v50  ;;  %vm1005_vm12 = vweird.f32 %v998_v50 }
 0x797   : > { %v1299_v51 = vpop.eup %1298 }
 0x798   : > { %v1000_v52 = vmul.f32 %v1299_v51, %v998_v50  ;;  %vm1006_vm11 = vweird.f32 %v1299_v51 }
 0x799   : > { %vm1007_vm13 = vmor %vm1005_vm12, %vm1006_vm11 }
 0x79a   : > { %v1001_v53 = vmul.f32 %v1299_v51, %v1000_v52 }
 0x79c   : > { %v1002_v54 = vmul.f32 0.5, %v1001_v53 }
 0x79e   : > { %v1003_v56 = vsub.f32 1.5, %v1002_v54 }
 0x7a0   : > { %v1004_v57 = vmul.f32 %v1299_v51, %v1003_v56 }
 0x7a2   : > { %v1008_v55 = vsel %vm1007_vm13, %v1299_v51, %v1004_v57 }
 0x7a3   : > { %v1009_v59 = vmul.f32 %v1008_v55, %v992_v45 }
 0x7a5   : > { %v1013_v60 = vmul.f32 %v1274_v58, %v1009_v59 }
 0x7a7   : > { %v1017_v61 = vadd.f32 %v1275_v2, %v1013_v60 }
 0x7a9   : > { %1018 = vst.msk [vmem:[%s510_s20] sm:$0xff] %vm538_vm0, %v1017_v61 }
 0x7aa   : > { %1387 = shalt.err (!%p1384_p10)
}
 0x7ab   : > { %1203 = dma.vmem_to_hbm [thread:$0]  (%p1585_p13), %s1033_s28, 128, %s1035_s27, %s1020_s22  }
 0x7ac PF: > { %s1805_s23 = sld [smem:[#allocation12_spill]] }
 0x7ad   : > { %s1806_s15 = sld [smem:[#allocation14_spill]] }
 0x7b2   : > { %s1046_s16 = sand.u32 1, %s1805_s23  }
 0x7b3   : > { %p1807_p11 = scmp.ge.s32.totalorder %s1806_s15, 2  ;;  %s1047_s21 = scalar_lea.sflag [#allocation5], %s1046_s16 }
 0x7b5   : > { %p1214_p0 = pnand %p1807_p11, %p1590_p4 }
 0x7b7   : > { %p1215_p2 = pneg %p1214_p0 }
 0x7b9   : > { %1413 = dma.done.wait (%p1215_p2), %s1047_s21, 128  }
 0x7ba   : > { %1415 = vsyncadd (%p1215_p2), %s1047_s21, 4294967168  ;;  %s1808_s16 = sld [smem:[#allocation15_spill]]  ;;  %s1811_s29 = smov %s1422_s30 }
 0x7bb   : > { %s1809_s20 = sld [smem:[#allocation13_spill]] }
 0x7bc   : > { %s1810_s15 = sld [smem:[#allocation16_spill]] }
 0x7c0   : > { %p28_p6 = scmp.ge.s32.totalorder %s1808_s16, 4  }
 0x7c1   : > { %s1812_s30 = smov %s1809_s20 }
 0x7c2   :  { %30 = sbr.rel (!%p28_p6) target bundleno = 9 (0x9), region = 128 }
 0x7c7   :  { %1053 = vsyncpa [#allocation4], 1 }
 0x7c8   :  { %1055 = vsyncpa [#allocation4 + $0x1], 1 }
 0x7c9   :  { %1056 = vsyncpa [#allocation7], 1 }
 0x7ca   :  { %1057 = vsyncpa [#allocation5], 1 }
 0x7cb   :  { %1059 = vsyncpa [#allocation5 + $0x1], 1 }

</bundles_post_ra>
